<compile_context>
chip_gen: v7x
topology: tpu7x:2x2x1
jax: 0.10.0
libtpu: 0.0.40
codegen_flags: <defaults>
</compile_context>

<pallas_src>
import jax
import jax.numpy as jnp
from jax.experimental import pallas as pl
from jax.experimental.pallas import tpu as pltpu


def _se_kernel(x_ref, w1_ref, b1_ref, w2_ref, b2_ref, o_ref):
    # x_ref:  (Nb, C, HW)  native dtype
    # w1_ref: (SE, C) f32   b1_ref: (SE, 1) f32
    # w2_ref: (C, SE) f32   b2_ref: (C, 1) f32
    # o_ref:  (Nb, C, HW)
    nb, _, hw = x_ref.shape
    inv_hw = 1.0 / hw

    w1 = w1_ref[...]
    b1 = b1_ref[...]
    w2 = w2_ref[...]
    b2 = b2_ref[...]

    # Static unroll over the (small) per-step batch; each iteration is pure
    # 2-D work: lane-reduce pool -> two tiny column matmuls -> lane-broadcast
    # multiply.  x is loaded from VMEM per element and never materialized as
    # a separate f32 copy.
    for b in range(nb):
        x = x_ref[b]                                                  # (C, HW)

        # ---- squeeze: global average pool over spatial (lanes), f32 acc ----
        pooled = jnp.sum(x, axis=-1, keepdims=True,
                         dtype=jnp.float32) * inv_hw                  # (C, 1)

        # ---- excite: 1x1 conv (C->SE) + swish ----
        h = jnp.dot(w1, pooled, preferred_element_type=jnp.float32) + b1  # (SE, 1)
        h = h * jax.nn.sigmoid(h)

        # ---- 1x1 conv (SE->C) + sigmoid gate ----
        g = jnp.dot(w2, h, preferred_element_type=jnp.float32) + b2       # (C, 1)
        g = jax.nn.sigmoid(g)

        # ---- scale: broadcast (C,1) gate along lanes, multiply in native dtype ----
        o_ref[b] = x * g.astype(o_ref.dtype)                          # (C, HW)


def se_block(x_nchw, w1, b1, w2, b2):
    """x_nchw: (N, C, H, W); w1: (SE, C, 1, 1); b1: (SE,); w2: (C, SE, 1, 1); b2: (C,)."""
    N, C, H, W = x_nchw.shape
    SE_CH = w1.shape[0]
    HW = H * W

    # Free reshapes only -- no NCHW<->NHWC transposes, no extra HBM traffic.
    x = x_nchw.reshape(N, C, HW)
    w1m = w1.reshape(SE_CH, C).astype(jnp.float32)   # (SE, C)
    b1m = b1.reshape(SE_CH, 1).astype(jnp.float32)   # (SE, 1)
    w2m = w2.reshape(C, SE_CH).astype(jnp.float32)   # (C, SE)
    b2m = b2.reshape(C, 1).astype(jnp.float32)       # (C, 1)

    # Batch elements per grid step: ~4 MiB per-step block (knee of the
    # block-size/roofline curve) so (2 in + 2 out) double buffers stay well
    # inside scoped VMEM on every generation, while amortizing per-step
    # overhead when individual elements are tiny.
    per_elem_bytes = C * HW * x.dtype.itemsize
    budget = 4 * 1024 * 1024
    nb = max(1, min(N, budget // max(per_elem_bytes, 1), 16))
    grid = pl.cdiv(N, nb)   # partial last block is safe: no cross-batch mixing

    # VMEM budget: 2x input + 2x output double buffers + weights/temporaries.
    needed = 4 * nb * per_elem_bytes + (4 << 20)
    vmem_limit = int(min(max(needed, 32 << 20), 64 << 20))
    # TODO(synk): for extreme spatial sizes (C*HW*itemsize >> VMEM) tile HW with
    # a pool-accumulate pass + multiply pass instead of one full-HW block.

    out = pl.pallas_call(
        _se_kernel,
        out_shape=jax.ShapeDtypeStruct((N, C, HW), x.dtype),
        grid_spec=pltpu.PrefetchScalarGridSpec(
            num_scalar_prefetch=0,
            grid=(grid,),
            in_specs=[
                pl.BlockSpec((nb, C, HW), lambda i: (i, 0, 0)),
                pl.BlockSpec((SE_CH, C), lambda i: (0, 0)),
                pl.BlockSpec((SE_CH, 1), lambda i: (0, 0)),
                pl.BlockSpec((C, SE_CH), lambda i: (0, 0)),
                pl.BlockSpec((C, 1), lambda i: (0, 0)),
            ],
            out_specs=pl.BlockSpec((nb, C, HW), lambda i: (i, 0, 0)),
        ),
        compiler_params=pltpu.CompilerParams(
            dimension_semantics=("parallel",),
            vmem_limit_bytes=vmem_limit),
    )(x, w1m, b1m, w2m, b2m)

    # Free reshape back to NCHW.
    return out.reshape(N, C, H, W)


def se_reference(x, w1, b1, w2, b2):
    """Pure-JAX reference mirroring the PyTorch forward (NCHW)."""
    pooled = jnp.mean(x, axis=(2, 3), keepdims=True)                       # (N,C,1,1)
    h = jnp.einsum('ncij,oc->noij', pooled, w1.reshape(w1.shape[0], -1)) \
        + b1.reshape(1, -1, 1, 1)
    h = h * jax.nn.sigmoid(h)
    g = jnp.einsum('nsij,os->noij', h, w2.reshape(w2.shape[0], -1)) \
        + b2.reshape(1, -1, 1, 1)
    g = jax.nn.sigmoid(g)
    return x * g


if __name__ == "__main__":
    key = jax.random.PRNGKey(0)
    k_x, k_w1, k_b1, k_w2, k_b2 = jax.random.split(key, 5)

    N, C, H, W = 2, 4, 16, 16
    SE_CH = 2   # se_channels

    x = jax.random.normal(k_x, (N, C, H, W), dtype=jnp.float32)
    # Conv2d(in_channels=C, se_channels, kernel_size=1, bias=True) params
    w1 = jax.random.normal(k_w1, (SE_CH, C, 1, 1), dtype=jnp.float32) * 0.1
    b1 = jax.random.normal(k_b1, (SE_CH,), dtype=jnp.float32) * 0.1
    w2 = jax.random.normal(k_w2, (C, SE_CH, 1, 1), dtype=jnp.float32) * 0.1
    b2 = jax.random.normal(k_b2, (C,), dtype=jnp.float32) * 0.1

    out = se_block(x, w1, b1, w2, b2)
    jax.block_until_ready(out)

    ref = se_reference(x, w1, b1, w2, b2)
    assert out.shape == (N, C, H, W)
    assert jnp.allclose(out, ref, atol=1e-5, rtol=1e-5), \
        f"max err {jnp.max(jnp.abs(out - ref))}"

    print("KERNEL_OK")
</pallas_src>

<mosaic_0001>
module attributes {stable_mosaic.version = 11 : i64} {
  func.func @_se_kernel(%arg0: i32, %arg1: memref<2x4x256xf32, #tpu.memory_space<vmem>>, %arg2: memref<2x4xf32, #tpu.memory_space<vmem>>, %arg3: memref<2x1xf32, #tpu.memory_space<vmem>>, %arg4: memref<4x2xf32, #tpu.memory_space<vmem>>, %arg5: memref<4x1xf32, #tpu.memory_space<vmem>>, %arg6: memref<2x4x256xf32, #tpu.memory_space<vmem>>) attributes {dimension_semantics = [#tpu.dimension_semantics<parallel>], iteration_bounds = array<i64: 1>, scalar_prefetch = 0 : i64, scratch_operands = 0 : i64, tpu.core_type = #tpu.core_type<tc>, window_params = [{transform_indices = @transform_0, window_bounds = array<i64: 2, 4, 256>}, {pipeline_mode = #tpu.pipeline_mode<synchronous>, transform_indices = @transform_1, window_bounds = array<i64: 2, 4>}, {pipeline_mode = #tpu.pipeline_mode<synchronous>, transform_indices = @transform_2, window_bounds = array<i64: 2, 1>}, {pipeline_mode = #tpu.pipeline_mode<synchronous>, transform_indices = @transform_3, window_bounds = array<i64: 4, 2>}, {pipeline_mode = #tpu.pipeline_mode<synchronous>, transform_indices = @transform_4, window_bounds = array<i64: 4, 1>}, {transform_indices = @transform_5, window_bounds = array<i64: 2, 4, 256>}]} {
    %c0 = arith.constant 0 : index
    %c0_0 = arith.constant 0 : index
    %0 = vector.load %arg2[%c0, %c0_0] : memref<2x4xf32, #tpu.memory_space<vmem>>, vector<2x4xf32>
    %c0_1 = arith.constant 0 : index
    %c0_2 = arith.constant 0 : index
    %1 = vector.load %arg3[%c0_1, %c0_2] : memref<2x1xf32, #tpu.memory_space<vmem>>, vector<2x1xf32>
    %c0_3 = arith.constant 0 : index
    %c0_4 = arith.constant 0 : index
    %2 = vector.load %arg4[%c0_3, %c0_4] : memref<4x2xf32, #tpu.memory_space<vmem>>, vector<4x2xf32>
    %c0_5 = arith.constant 0 : index
    %c0_6 = arith.constant 0 : index
    %3 = vector.load %arg5[%c0_5, %c0_6] : memref<4x1xf32, #tpu.memory_space<vmem>>, vector<4x1xf32>
    %c0_7 = arith.constant 0 : index
    %c0_8 = arith.constant 0 : index
    %c0_9 = arith.constant 0 : index
    %4 = vector.load %arg1[%c0_7, %c0_8, %c0_9] : memref<2x4x256xf32, #tpu.memory_space<vmem>>, vector<1x4x256xf32>
    %5 = vector.shape_cast %4 : vector<1x4x256xf32> to vector<4x256xf32>
    %cst = arith.constant dense<0.000000e+00> : vector<4xf32>
    %6 = vector.multi_reduction <add>, %5, %cst [1] : vector<4x256xf32> to vector<4xf32>
    %7 = vector.shape_cast %6 : vector<4xf32> to vector<4x1xf32>
    %cst_10 = arith.constant 3.906250e-03 : f32
    %8 = vector.broadcast %cst_10 : f32 to vector<4x1xf32>
    %9 = arith.mulf %7, %8 : vector<4x1xf32>
    %cst_11 = arith.constant dense<0.000000e+00> : vector<2x1xf32>
    %10 = tpu.matmul %0, %9, %cst_11 {dimension_numbers = #tpu.dot_dimension_numbers<[1], [0], [0], [1], [0, 0, 1, 1], [], []>} : vector<2x4xf32>, vector<4x1xf32>, vector<2x1xf32> -> vector<2x1xf32>
    %11 = arith.addf %10, %1 : vector<2x1xf32>
    %12 = arith.negf %11 : vector<2x1xf32>
    %13 = math.exp %12 : vector<2x1xf32>
    %cst_12 = arith.constant 1.000000e+00 : f32
    %14 = vector.broadcast %cst_12 : f32 to vector<2x1xf32>
    %15 = arith.addf %14, %13 : vector<2x1xf32>
    %16 = arith.divf %14, %15 : vector<2x1xf32>
    %17 = arith.mulf %11, %16 : vector<2x1xf32>
    %cst_13 = arith.constant dense<0.000000e+00> : vector<4x1xf32>
    %18 = tpu.matmul %2, %17, %cst_13 {dimension_numbers = #tpu.dot_dimension_numbers<[1], [0], [0], [1], [0, 0, 1, 1], [], []>} : vector<4x2xf32>, vector<2x1xf32>, vector<4x1xf32> -> vector<4x1xf32>
    %19 = arith.addf %18, %3 : vector<4x1xf32>
    %20 = arith.negf %19 : vector<4x1xf32>
    %21 = math.exp %20 : vector<4x1xf32>
    %cst_14 = arith.constant 1.000000e+00 : f32
    %22 = vector.broadcast %cst_14 : f32 to vector<4x1xf32>
    %23 = arith.addf %22, %21 : vector<4x1xf32>
    %24 = arith.divf %22, %23 : vector<4x1xf32>
    %25 = vector.broadcast %24 : vector<4x1xf32> to vector<4x256xf32>
    %26 = arith.mulf %5, %25 : vector<4x256xf32>
    %c0_15 = arith.constant 0 : index
    %c0_16 = arith.constant 0 : index
    %c0_17 = arith.constant 0 : index
    %27 = vector.load %arg6[%c0_15, %c0_16, %c0_17] : memref<2x4x256xf32, #tpu.memory_space<vmem>>, vector<1x4x256xf32>
    %28 = vector.shape_cast %27 : vector<1x4x256xf32> to vector<4x256xf32>
    %29 = vector.shape_cast %26 : vector<4x256xf32> to vector<1x4x256xf32>
    tpu.vector_store %arg6[%c0_15, %c0_16, %c0_17], %29 {strides = array<i32>} : memref<2x4x256xf32, #tpu.memory_space<vmem>>, vector<1x4x256xf32>,
    %c1 = arith.constant 1 : index
    %c0_18 = arith.constant 0 : index
    %c0_19 = arith.constant 0 : index
    %30 = vector.load %arg1[%c1, %c0_18, %c0_19] : memref<2x4x256xf32, #tpu.memory_space<vmem>>, vector<1x4x256xf32>
    %31 = vector.shape_cast %30 : vector<1x4x256xf32> to vector<4x256xf32>
    %cst_20 = arith.constant dense<0.000000e+00> : vector<4xf32>
    %32 = vector.multi_reduction <add>, %31, %cst_20 [1] : vector<4x256xf32> to vector<4xf32>
    %33 = vector.shape_cast %32 : vector<4xf32> to vector<4x1xf32>
    %cst_21 = arith.constant 3.906250e-03 : f32
    %34 = vector.broadcast %cst_21 : f32 to vector<4x1xf32>
    %35 = arith.mulf %33, %34 : vector<4x1xf32>
    %cst_22 = arith.constant dense<0.000000e+00> : vector<2x1xf32>
    %36 = tpu.matmul %0, %35, %cst_22 {dimension_numbers = #tpu.dot_dimension_numbers<[1], [0], [0], [1], [0, 0, 1, 1], [], []>} : vector<2x4xf32>, vector<4x1xf32>, vector<2x1xf32> -> vector<2x1xf32>
    %37 = arith.addf %36, %1 : vector<2x1xf32>
    %38 = arith.negf %37 : vector<2x1xf32>
    %39 = math.exp %38 : vector<2x1xf32>
    %cst_23 = arith.constant 1.000000e+00 : f32
    %40 = vector.broadcast %cst_23 : f32 to vector<2x1xf32>
    %41 = arith.addf %40, %39 : vector<2x1xf32>
    %42 = arith.divf %40, %41 : vector<2x1xf32>
    %43 = arith.mulf %37, %42 : vector<2x1xf32>
    %cst_24 = arith.constant dense<0.000000e+00> : vector<4x1xf32>
    %44 = tpu.matmul %2, %43, %cst_24 {dimension_numbers = #tpu.dot_dimension_numbers<[1], [0], [0], [1], [0, 0, 1, 1], [], []>} : vector<4x2xf32>, vector<2x1xf32>, vector<4x1xf32> -> vector<4x1xf32>
    %45 = arith.addf %44, %3 : vector<4x1xf32>
    %46 = arith.negf %45 : vector<4x1xf32>
    %47 = math.exp %46 : vector<4x1xf32>
    %cst_25 = arith.constant 1.000000e+00 : f32
    %48 = vector.broadcast %cst_25 : f32 to vector<4x1xf32>
    %49 = arith.addf %48, %47 : vector<4x1xf32>
    %50 = arith.divf %48, %49 : vector<4x1xf32>
    %51 = vector.broadcast %50 : vector<4x1xf32> to vector<4x256xf32>
    %52 = arith.mulf %31, %51 : vector<4x256xf32>
    %c1_26 = arith.constant 1 : index
    %c0_27 = arith.constant 0 : index
    %c0_28 = arith.constant 0 : index
    %53 = vector.load %arg6[%c1_26, %c0_27, %c0_28] : memref<2x4x256xf32, #tpu.memory_space<vmem>>, vector<1x4x256xf32>
    %54 = vector.shape_cast %53 : vector<1x4x256xf32> to vector<4x256xf32>
    %55 = vector.shape_cast %52 : vector<4x256xf32> to vector<1x4x256xf32>
    tpu.vector_store %arg6[%c1_26, %c0_27, %c0_28], %55 {strides = array<i32>} : memref<2x4x256xf32, #tpu.memory_space<vmem>>, vector<1x4x256xf32>,
    return
  }
  func.func @transform_0(%arg0: i32) -> (i32, i32, i32) {
    %c0_i32 = arith.constant 0 : i32
    %c0_i32_0 = arith.constant 0 : i32
    %c0_i32_1 = arith.constant 0 : i32
    return %arg0, %c0_i32, %c0_i32_0 : i32, i32, i32
  }
  func.func @transform_1(%arg0: i32) -> (i32, i32) {
    %c0_i32 = arith.constant 0 : i32
    %c0_i32_0 = arith.constant 0 : i32
    %c0_i32_1 = arith.constant 0 : i32
    return %c0_i32, %c0_i32_0 : i32, i32
  }
  func.func @transform_2(%arg0: i32) -> (i32, i32) {
    %c0_i32 = arith.constant 0 : i32
    %c0_i32_0 = arith.constant 0 : i32
    %c0_i32_1 = arith.constant 0 : i32
    return %c0_i32, %c0_i32_0 : i32, i32
  }
  func.func @transform_3(%arg0: i32) -> (i32, i32) {
    %c0_i32 = arith.constant 0 : i32
    %c0_i32_0 = arith.constant 0 : i32
    %c0_i32_1 = arith.constant 0 : i32
    return %c0_i32, %c0_i32_0 : i32, i32
  }
  func.func @transform_4(%arg0: i32) -> (i32, i32) {
    %c0_i32 = arith.constant 0 : i32
    %c0_i32_0 = arith.constant 0 : i32
    %c0_i32_1 = arith.constant 0 : i32
    return %c0_i32, %c0_i32_0 : i32, i32
  }
  func.func @transform_5(%arg0: i32) -> (i32, i32, i32) {
    %c0_i32 = arith.constant 0 : i32
    %c0_i32_0 = arith.constant 0 : i32
    %c0_i32_1 = arith.constant 0 : i32
    return %arg0, %c0_i32, %c0_i32_0 : i32, i32, i32
  }
}

</mosaic_0001>

<bundles_post_ra>
// kernel: tpu_custom_call.1
= control target key start
LH: loop header
LB: loop body
LE: loop exit
PB: predicated region body
PF: predicated region fallthrough
CT: control target
= control target key end

     0   :  { %10 = vsyncpa [#allocation3], 0  ;;  %s652_s0 = inlined_call_operand.hbm [shape: f32[2,4,256], index: 0, kind: input, shape index: {}]   ;;  %s653_s1 = inlined_call_operand.vmem [shape: f32[2,4], index: 1, kind: input, shape index: {}]   ;;  %s654_s2 = inlined_call_operand.vmem [shape: f32[2,1], index: 2, kind: input, shape index: {}]   ;;  %s655_s3 = inlined_call_operand.vmem [shape: f32[4,2], index: 3, kind: input, shape index: {}]   ;;  %s656_s4 = inlined_call_operand.vmem [shape: f32[4,1], index: 4, kind: input, shape index: {}]   ;;  %s657_s5 = inlined_call_operand.hbm [shape: f32[2,4,256], index: 5, kind: output, shape index: {}]  }
   0x1   :  { %11 = vsyncpa [#allocation4], 0  ;;  %s550_s18 = smov [#allocation2]   ;;  %s502_s22 = scalar_lea.hbm %s652_s0, 256 }
   0x2   :  { %s17_s19 = sshll.u32 %s550_s18, 4  ;;  %p503_p0 = scmp.ne.s32.totalorder %s652_s0, %s502_s22  ;;  %s18_s19 = int_to_ptr.vmem [resolvable:$true] %s17_s19 }
   0x3   :  { %p506_p1 = scmp.lt.u32.totalorder %s502_s22, %s652_s0 }
   0x5   :  { %p508_p2 = pnand %p506_p1, %p503_p0 }
   0x7   :  { %511 = shalt.err (!%p508_p2)
}
   0x8   :  { %s512_s27 = scalar_lea.vmem %s18_s19, 256  ;;  %p517_p4 = scmp.lt.s32.totalorder %s18_s19, %s18_s19 }
   0x9   :  { %p513_p3 = scmp.ne.s32.totalorder %s18_s19, %s512_s27  ;;  %p518_p5 = scmp.lt.s32.totalorder %s512_s27, %s512_s27 }
   0xb   :  { %p519_p6 = por %p518_p5, %p517_p4 }
   0xd   :  { %p520_p7 = pnand %p519_p6, %p513_p3 }
   0xf   :  { %523 = shalt.err (!%p520_p7)
}
  0x10   :  { %s551_s28 = smov 128   ;;  %s552_s29 = smov 8  }
  0x11   :  { %23 = dma.hbm_to_vmem [thread:$0]  %s652_s0, 256, %s18_s19, [#allocation3], %s551_s28, %s551_s28, %s552_s29  }
  0x12   :  { %546 = dma.done.wait [#allocation3], 256  }
  0x13   :  { %547 = vsyncadd [#allocation3], 4294967040  ;;  %vm43_vm0 = vcmask 1043456   ;;  %v603_v0 = vld [vmem:[#allocation2] sm:$0xff]  ;;  %v605_v1 = vld [vmem:[#allocation2 + $0x8] sm:$0xff]  ;;  %v553_v10 = vmov 0.0   ;;  %v225_v52 = vlaneseq }
  0x14   :  { %v41_v2 = vcombine.high %v603_v0, %v603_v0  ;;  %v44_v3 = vsel %vm43_vm0, %v603_v0, 0.0  ;;  %v235_v4 = vcombine.high %v605_v1, %v605_v1  ;;  %v237_v6 = vsel %vm43_vm0, %v605_v1, 0.0  ;;  %454 = vmatprep.subr.mxu0 %v553_v10  ;;  %459 = vmatprep.subr.mxu1 %v553_v10  ;;  %v35_v13 = vld [vmem:[%s653_s1] sm:$0x3] }
  0x15   :  { %vm554_vm1 = vmmov 0   ;;  %vm50_vm2 = vcmask 31744   ;;  %v36_v16 = vld [vmem:[%s654_s2] sm:$0x3]  ;;  %vm138_vm3 = vcmask 1041408   ;;  %vm134_vm4 = vcmask 15360  }
  0x16   :  { %v45_v5 = vsel %vm43_vm0, %v41_v2, 0.0  ;;  %v238_v7 = vsel %vm43_vm0, %v235_v4, 0.0  ;;  %456 = vmatprep.mubr.msk.f32.mxu0 %vm554_vm1, %v553_v10  ;;  %461 = vmatprep.mubr.msk.f32.mxu1 %vm554_vm1, %v553_v10  ;;  %v37_v31 = vld [vmem:[%s655_s3] sm:$0xf]  ;;  %v555_v34 = vmov 0   ;;  %v226_v54 = vshrl.u32 %v225_v52, 7 }
  0x17   :  { %v46_v8 = vadd.f32 %v45_v5, %v44_v3  ;;  %v239_v9 = vadd.f32 %v238_v7, %v237_v6  ;;  %482 = vset.pattern.permute.xlu1 %v555_v34  ;;  %483 = vset.pattern.permute.xlu0 %v555_v34  ;;  %v38_v35 = vld [vmem:[%s656_s4] sm:$0xf]  ;;  %v556_v50 = vmov 839922192   ;;  %s557_s3 = smov [#allocation5]  }
  0x18   :  { %v223_v51 = vunpack.c.l.s4 %v556_v50  ;;  %s422_s4 = sshll.u32 %s557_s3, 4  ;;  %s423_s4 = int_to_ptr.vmem [resolvable:$true] %s422_s4 }
  0x19   :  { %47 = vadd.xlane.f32.xlu0 %v46_v8  ;;  %s524_s12 = scalar_lea.vmem %s423_s4, 256  ;;  %p529_p9 = scmp.lt.s32.totalorder %s423_s4, %s423_s4 }
  0x1a   :  { %v224_v53 = vunpack.c.0.s8 %v223_v51  ;;  %p525_p8 = scmp.ne.s32.totalorder %s423_s4, %s524_s12  ;;  %p530_p10 = scmp.lt.s32.totalorder %s524_s12, %s524_s12 }
  0x1c   :  { %v227_v55 = vsub.s32 %v224_v53, %v226_v54  ;;  %p531_p11 = por %p530_p10, %p529_p9 }
  0x1d   :  { %240 = vadd.xlane.f32.xlu0 %v239_v9 }
  0x1e   :  { %p532_p12 = pnand %p531_p11, %p525_p8 }
  0xa6   :  { %v48_v11 = vpop.xlane.xlu0 %47 }
  0xa7   :  { %v49_v12 = vmul.f32 0.00390625, %v48_v11 }
  0xa9   :  { %455 = vmatpush3.msk.msra.mxu0 %vm43_vm0, %v49_v12 }
  0xaa   :  { %v241_v14 = vpop.xlane.xlu0 %240  ;;  %457 = vmatmul.mubr.msk.f32.vlgmr.msra.gmra.mrb[0].mxu0 %vm50_vm2, %v35_v13  ;;  %464 = vmatprep.subr.mxu0 %v553_v10 }
  0xab   :  { %v242_v15 = vmul.f32 0.00390625, %v241_v14  ;;  %466 = vmatprep.mubr.msk.f32.mxu0 %vm554_vm1, %v553_v10 }
  0xad   :  { %465 = vmatpush3.msk.msra.mxu0 %vm43_vm0, %v242_v15 }
  0xae   :  { %467 = vmatmul.mubr.msk.f32.vlgmr.msra.gmra.mrb[2].mxu0 %vm50_vm2, %v35_v13 }
 0x17d   :  { %v123_v17 = vpop.f32.mrb[0].mxu0 }
 0x17e   :  { %v124_v18 = vadd.f32 %v123_v17, %v36_v16  ;;  %v458_v19 = vpop.f32.mrb[1].mxu0 }
 0x180   :  { %v436_v20 = vmul.f32 -1.442695, %v124_v18 }
 0x181   :  { %v312_v21 = vpop.f32.mrb[2].mxu0 }
 0x182   :  { %486 = vpow2.f32 %v436_v20  ;;  %v313_v22 = vadd.f32 %v312_v21, %v36_v16  ;;  %v468_v23 = vpop.f32.mrb[3].mxu0 }
 0x184   :  { %v442_v24 = vmul.f32 -1.442695, %v313_v22 }
 0x186   :  { %488 = vpow2.f32 %v442_v24 }
 0x18c   :  { %v487_v25 = vpop.eup %486 }
 0x18d   :  { %v130_v26 = vadd.f32 1.0, %v487_v25 }
 0x18f   :  { %490 = vrcp.f32 %v130_v26 }
 0x190   :  { %v489_v27 = vpop.eup %488 }
 0x191   :  { %v319_v28 = vadd.f32 1.0, %v489_v27 }
 0x193   :  { %492 = vrcp.f32 %v319_v28 }
 0x199   :  { %v491_v29 = vpop.eup %490 }
 0x19a   :  { %v133_v30 = vmul.f32 %v491_v29, %v124_v18 }
 0x19c   :  { %460 = vmatpush3.msk.msra.mxu1 %vm138_vm3, %v133_v30 }
 0x19d   :  { %v493_v32 = vpop.eup %492  ;;  %462 = vmatmul.mubr.msk.f32.vlgmr.msra.gmra.mrb[0].mxu1 %vm134_vm4, %v37_v31  ;;  %469 = vmatprep.subr.mxu1 %v553_v10 }
 0x19e   :  { %v322_v33 = vmul.f32 %v493_v32, %v313_v22  ;;  %471 = vmatprep.mubr.msk.f32.mxu1 %vm554_vm1, %v553_v10 }
 0x1a0   :  { %470 = vmatpush3.msk.msra.mxu1 %vm138_vm3, %v322_v33 }
 0x1a1   :  { %472 = vmatmul.mubr.msk.f32.vlgmr.msra.gmra.mrb[2].mxu1 %vm134_vm4, %v37_v31 }
 0x270   :  { %v208_v36 = vpop.f32.mrb[0].mxu1 }
 0x271   :  { %v209_v37 = vadd.f32 %v208_v36, %v38_v35  ;;  %v463_v38 = vpop.f32.mrb[1].mxu1 }
 0x273   :  { %v439_v39 = vmul.f32 -1.442695, %v209_v37 }
 0x274   :  { %v392_v40 = vpop.f32.mrb[2].mxu1 }
 0x275   :  { %494 = vpow2.f32 %v439_v39  ;;  %v393_v41 = vadd.f32 %v392_v40, %v38_v35  ;;  %v473_v42 = vpop.f32.mrb[3].mxu1 }
 0x277   :  { %v445_v43 = vmul.f32 -1.442695, %v393_v41 }
 0x279   :  { %496 = vpow2.f32 %v445_v43 }
 0x27f   :  { %v495_v44 = vpop.eup %494 }
 0x280   :  { %v215_v45 = vadd.f32 1.0, %v495_v44 }
 0x282   :  { %498 = vrcp.f32 %v215_v45 }
 0x283   :  { %v497_v46 = vpop.eup %496 }
 0x284   :  { %v399_v47 = vadd.f32 1.0, %v497_v46 }
 0x286   :  { %500 = vrcp.f32 %v399_v47 }
 0x28c   :  { %v499_v48 = vpop.eup %498 }
 0x28d   :  { %220 = vperm.xlu1 %482, %v499_v48  }
 0x290   :  { %v501_v49 = vpop.eup %500 }
 0x291   :  { %404 = vperm.xlu1 %482, %v501_v49  }
 0x30c   :  { %v221_v56 = vpop.permute.xlu1 %220 }
 0x30d   :  { %v228_v57 = vrot.slane %v221_v56, %v227_v55 }
 0x30f   :  { %v230_v58 = vmul.f32 %v228_v57, %v603_v0 }
 0x310   :  { %v405_v59 = vpop.permute.xlu1 %404 }
 0x311   :  { %231 = vst [vmem:[#allocation5] sm:$0xff] %v230_v58  ;;  %v412_v60 = vrot.slane %v405_v59, %v227_v55 }
 0x313   :  { %v414_v61 = vmul.f32 %v412_v60, %v605_v1 }
 0x315   :  { %416 = vst [vmem:[#allocation5 + $0x8] sm:$0xff] %v414_v61 }
 0x316   :  { %535 = shalt.err (!%p532_p12)
}
 0x317   :  { %s536_s15 = scalar_lea.hbm %s657_s5, 256 }
 0x318   :  { %p537_p13 = scmp.ne.s32.totalorder %s657_s5, %s536_s15  ;;  %p540_p0 = scmp.lt.u32.totalorder %s536_s15, %s657_s5 }
 0x31a   :  { %p542_p1 = pnand %p540_p0, %p537_p13 }
 0x31c   :  { %545 = shalt.err (!%p542_p1)
}
 0x31d   :  { %428 = dma.vmem_to_hbm [thread:$0]  %s423_s4, 256, %s657_s5, [#allocation4], %s551_s28, %s551_s28, %s552_s29  }
 0x31e   :  { %548 = dma.done.wait [#allocation4], 256  }
 0x31f   :  { %549 = vsyncadd [#allocation4], 4294967040 }
 0x320   :  { %432 = vsyncpa [#allocation3], 1 }
 0x321   :  { %433 = vsyncpa [#allocation4], 1 }

</bundles_post_ra>
